<compile_context>
chip_gen: v7x
topology: tpu7x:2x2x1
jax: 0.10.0
libtpu: 0.0.40
codegen_flags: <defaults>
</compile_context>

<pallas_src>
import functools

import jax
import jax.numpy as jnp
from jax.experimental import pallas as pl
from jax.experimental.pallas import tpu as pltpu

HIDDEN = 32        # `hidden` of GlobalModel
MLP_HIDDEN = 100   # default MLP hidden width (padded to 128 inside the kernel)
HP = 128           # padded lane width used everywhere inside the kernel
LN_EPS = 1e-5      # torch.nn.LayerNorm default


def _round_up(a, b):
    return (a + b - 1) // b * b


def _global_model_kernel(batch_ref, x_ref, u_ref, w_ref, v_ref, out_ref, agg_ref,
                         *, n_nodes, tile_n, hidden, ragged):
    """Grid axis 0 tiles the node dimension N (reduction / 'arbitrary')."""
    step = pl.program_id(0)
    H = hidden
    B = agg_ref.shape[0]          # padded graph count (multiple of 8)
    tn = x_ref.shape[0]           # node tile size

    @pl.when(step == 0)
    def _():
        agg_ref[...] = jnp.zeros_like(agg_ref)

    # --- scatter_sum(x, batch) for this N-tile as a one-hot MXU matmul ---
    x = x_ref[...]                                               # [tn, H] f32
    if ragged:
        # x is not padded in HBM: tail rows of the last tile hold garbage.
        # Zero them (a zero one-hot row alone is NOT enough: NaN * 0 = NaN).
        row = step * tile_n + jax.lax.broadcasted_iota(jnp.int32, (tn, 1), 0)
        x = jnp.where(row < n_nodes, x, 0.0)

    batch = batch_ref[...]                                       # [1, tn] i32
    gids = jax.lax.broadcasted_iota(jnp.int32, (B, tn), 0)       # [B, tn]
    onehot = (gids == batch).astype(jnp.float32)
    # accumulate per-graph sums into lanes [H, 2H) of the wide scratch so the
    # first MLP layer is a single (u + agg) @ W1 dot in the epilogue
    agg_ref[:, H:2 * H] = agg_ref[:, H:2 * H] + jnp.dot(
        onehot, x, preferred_element_type=jnp.float32)

    # --- on the last N-tile: fused MLP + LayerNorm + residual ---
    @pl.when(step == pl.num_programs(0) - 1)
    def _():
        u = u_ref[...]                                           # [B, 128] (lanes >= H are 0)
        ua = u + agg_ref[...]                                    # u in [0,H), agg in [H,2H)

        h = jnp.dot(ua, w_ref[0], preferred_element_type=jnp.float32) + v_ref[0:1, :]
        h = jnp.maximum(h, 0.0)
        h = jnp.maximum(
            jnp.dot(h, w_ref[1], preferred_element_type=jnp.float32) + v_ref[1:2, :], 0.0)
        h = jnp.maximum(
            jnp.dot(h, w_ref[2], preferred_element_type=jnp.float32) + v_ref[2:3, :], 0.0)
        h = jnp.dot(h, w_ref[3], preferred_element_type=jnp.float32) + v_ref[3:4, :]
        # lanes >= H of h are exactly zero (zero-padded weights / biases)

        # LayerNorm over the first H lanes only (biased variance, eps=1e-5)
        inv_h = 1.0 / H
        mean = jnp.sum(h, axis=-1, keepdims=True) * inv_h
        lane = jax.lax.broadcasted_iota(jnp.int32, h.shape, 1)
        centered = jnp.where(lane < H, h - mean, 0.0)
        var = jnp.sum(centered * centered, axis=-1, keepdims=True) * inv_h
        normed = centered * jax.lax.rsqrt(var + LN_EPS)
        y = normed * v_ref[4:5, :] + v_ref[5:6, :]               # gamma / beta (zero-padded)

        out_ref[...] = u + y                                     # padded lanes stay 0


def init_params(key, hidden=HIDDEN, mlp_hidden=MLP_HIDDEN):
    """Deterministic synthetic parameters (weights stored [in, out], unpadded)."""
    ks = jax.random.split(key, 8)

    def lin(kw, kb, n_in, n_out):
        scale = 1.0 / jnp.sqrt(jnp.float32(n_in))
        w = jax.random.uniform(kw, (n_in, n_out), jnp.float32, -scale, scale)
        b = jax.random.uniform(kb, (1, n_out), jnp.float32, -scale, scale)
        return w, b

    w1, b1 = lin(ks[0], ks[1], 2 * hidden, mlp_hidden)
    w2, b2 = lin(ks[2], ks[3], mlp_hidden, mlp_hidden)
    w3, b3 = lin(ks[4], ks[5], mlp_hidden, mlp_hidden)
    w4, b4 = lin(ks[6], ks[7], mlp_hidden, hidden)
    gamma = jnp.ones((1, hidden), jnp.float32)
    beta = jnp.zeros((1, hidden), jnp.float32)
    return dict(w1=w1, b1=b1, w2=w2, b2=b2, w3=w3, b3=b3, w4=w4, b4=b4,
                gamma=gamma, beta=beta)


def _pad2(w):
    out = jnp.zeros((HP, HP), jnp.float32)
    return out.at[:w.shape[0], :w.shape[1]].set(w.astype(jnp.float32))


def _pad1(v):
    v = v.reshape(-1).astype(jnp.float32)
    return jnp.zeros((HP,), jnp.float32).at[:v.shape[0]].set(v)


def _vmem_limit_bytes(tile_n, b_pad):
    """Explicit VMEM budget (x tile is lane-padded H=32 -> 128 in VMEM)."""
    x_bufs = 2 * tile_n * HP * 4                 # x tiles, double-buffered, lane-padded
    bid_bufs = 2 * 8 * max(tile_n, 128) * 4      # batch ids, sublane-padded 1 -> 8
    consts = 2 * (b_pad * HP + 4 * HP * HP + 8 * HP) * 4
    temps = 4 * b_pad * tile_n * 4               # one-hot + matmul staging
    scratch = b_pad * HP * 4
    out = 2 * b_pad * HP * 4
    need = x_bufs + bid_bufs + consts + temps + scratch + out
    # clamp: >=16 MiB (v5e scoped default), <=32 MiB (comfortably under v7x 64 MiB)
    return int(min(32 * 1024 * 1024, max(16 * 1024 * 1024, 2 * need)))


def global_model_forward(x, edge_index, edge_attr, u, batch, params, *, tile_n=4096):
    # edge_index / edge_attr are unused by GlobalModel.forward (signature parity).
    del edge_index, edge_attr
    B, H = u.shape
    N = x.shape[0]
    assert 2 * H <= HP and params["w1"].shape[1] <= HP

    # --- node-axis tiling: x stays unpadded in HBM, ragged tail masked in-kernel ---
    if N <= tile_n:
        tile_n = N                 # single full block (block dims == array dims)
    else:
        assert tile_n % 128 == 0, "tile_n must be a multiple of 128 when N > tile_n"
    n_tiles = pl.cdiv(N, tile_n)
    ragged = (N % tile_n) != 0

    # --- graph axis padded to a multiple of 8 sublanes ---
    B_pad = max(8, _round_up(B, 8))

    x_f32 = x.astype(jnp.float32)
    batch_2d = batch.astype(jnp.int32).reshape(1, N)
    u_p = jnp.zeros((B_pad, HP), jnp.float32).at[:B, :H].set(u.astype(jnp.float32))

    # pack all weights into one [4, 128, 128] buffer and all vectors into [8, 128]
    W = jnp.stack([_pad2(params["w1"]), _pad2(params["w2"]),
                   _pad2(params["w3"]), _pad2(params["w4"])])
    zero_row = jnp.zeros((HP,), jnp.float32)
    V = jnp.stack([_pad1(params["b1"]), _pad1(params["b2"]), _pad1(params["b3"]),
                   _pad1(params["b4"]), _pad1(params["gamma"]), _pad1(params["beta"]),
                   zero_row, zero_row])

    kernel = functools.partial(_global_model_kernel, n_nodes=N, tile_n=tile_n,
                               hidden=H, ragged=ragged)

    out_p = pl.pallas_call(
        kernel,
        out_shape=jax.ShapeDtypeStruct((B_pad, HP), jnp.float32),
        grid_spec=pltpu.PrefetchScalarGridSpec(
            num_scalar_prefetch=0,
            grid=(n_tiles,),
            in_specs=[
                pl.BlockSpec((1, tile_n), lambda i: (0, i)),      # batch ids
                pl.BlockSpec((tile_n, H), lambda i: (i, 0)),      # x tile (unpadded N)
                pl.BlockSpec((B_pad, HP), lambda i: (0, 0)),      # u (padded)
                pl.BlockSpec((4, HP, HP), lambda i: (0, 0, 0)),   # packed weights
                pl.BlockSpec((8, HP), lambda i: (0, 0)),          # packed biases/LN
            ],
            out_specs=pl.BlockSpec((B_pad, HP), lambda i: (0, 0)),
            scratch_shapes=[pltpu.VMEM((B_pad, HP), jnp.float32)],  # agg accumulator
        ),
        compiler_params=pltpu.CompilerParams(
            dimension_semantics=("arbitrary",),                   # N is a reduction axis
            vmem_limit_bytes=_vmem_limit_bytes(tile_n, B_pad),
        ),
    )(batch_2d, x_f32, u_p, W, V)

    return out_p[:B, :H]


def reference_forward(x, u, batch, params):
    """Pure-JAX reference (unpadded parameters) for correctness checking."""
    B = u.shape[0]
    agg = jax.ops.segment_sum(x, batch, num_segments=B)
    h = jnp.concatenate([u, agg], axis=1)
    h = jnp.maximum(h @ params["w1"] + params["b1"], 0.0)
    h = jnp.maximum(h @ params["w2"] + params["b2"], 0.0)
    h = jnp.maximum(h @ params["w3"] + params["b3"], 0.0)
    h = h @ params["w4"] + params["b4"]
    mean = jnp.mean(h, axis=-1, keepdims=True)
    var = jnp.mean((h - mean) ** 2, axis=-1, keepdims=True)
    h = (h - mean) * jax.lax.rsqrt(var + LN_EPS)
    h = h * params["gamma"] + params["beta"]
    return u + h


if __name__ == "__main__":
    key = jax.random.PRNGKey(0)
    k_x, k_u, k_p, k_x2, k_u2, k_b2 = jax.random.split(key, 6)

    H = HIDDEN
    params = init_params(k_p)

    # --- test 1: small single-tile case (B=2 graphs, N=8 nodes) ---
    N, B, E = 8, 2, 12
    x = jax.random.normal(k_x, (N, H), jnp.float32)
    u = jax.random.normal(k_u, (B, H), jnp.float32)
    batch = jnp.array([0, 0, 0, 0, 1, 1, 1, 1], jnp.int32)          # node -> graph id
    edge_index = jnp.zeros((2, E), jnp.int32)                        # unused
    edge_attr = jnp.zeros((E, H), jnp.float32)                       # unused

    out = global_model_forward(x, edge_index, edge_attr, u, batch, params)
    out = jax.block_until_ready(out)
    ref = reference_forward(x, u, batch, params)
    assert out.shape == (B, H)
    assert jnp.allclose(out, ref, atol=1e-4, rtol=1e-4), "single-tile mismatch"

    # --- test 2: multi-tile accumulator path with a ragged final tile ---
    N2, B2 = 300, 3                                   # 300 % 128 != 0 -> masked tail
    x2 = jax.random.normal(k_x2, (N2, H), jnp.float32)
    u2 = jax.random.normal(k_u2, (B2, H), jnp.float32)
    batch2 = jnp.sort(jax.random.randint(k_b2, (N2,), 0, B2)).astype(jnp.int32)
    out2 = global_model_forward(x2, edge_index, edge_attr, u2, batch2, params,
                                tile_n=128)
    out2 = jax.block_until_ready(out2)
    ref2 = reference_forward(x2, u2, batch2, params)
    assert out2.shape == (B2, H)
    assert jnp.allclose(out2, ref2, atol=1e-4, rtol=1e-4), "multi-tile mismatch"

    print("KERNEL_OK")
</pallas_src>

<mosaic_0001>
module attributes {stable_mosaic.version = 11 : i64} {
  func.func @_global_model_kernel(%arg0: i32, %arg1: memref<1x8xi32, #tpu.memory_space<vmem>>, %arg2: memref<8x32xf32, #tpu.memory_space<vmem>>, %arg3: memref<8x128xf32, #tpu.memory_space<vmem>>, %arg4: memref<4x128x128xf32, #tpu.memory_space<vmem>>, %arg5: memref<8x128xf32, #tpu.memory_space<vmem>>, %arg6: memref<8x128xf32, #tpu.memory_space<vmem>>, %arg7: memref<8x128xf32, #tpu.memory_space<vmem>>) attributes {dimension_semantics = [#tpu.dimension_semantics<arbitrary>], iteration_bounds = array<i64: 1>, scalar_prefetch = 0 : i64, scratch_operands = 1 : i64, tpu.core_type = #tpu.core_type<tc>, window_params = [{transform_indices = @transform_0, window_bounds = array<i64: 1, 8>}, {transform_indices = @transform_1, window_bounds = array<i64: 8, 32>}, {pipeline_mode = #tpu.pipeline_mode<synchronous>, transform_indices = @transform_2, window_bounds = array<i64: 8, 128>}, {pipeline_mode = #tpu.pipeline_mode<synchronous>, transform_indices = @transform_3, window_bounds = array<i64: 4, 128, 128>}, {pipeline_mode = #tpu.pipeline_mode<synchronous>, transform_indices = @transform_4, window_bounds = array<i64: 8, 128>}, {pipeline_mode = #tpu.pipeline_mode<synchronous>, transform_indices = @transform_5, window_bounds = array<i64: 8, 128>}]} {
    %c0_i32 = arith.constant 0 : i32
    %0 = arith.cmpi eq, %arg0, %c0_i32 : i32
    %1 = arith.extui %0 : i1 to i32
    %c0_i32_0 = arith.constant 0 : i32
    %2 = arith.cmpi ne, %1, %c0_i32_0 : i32
    scf.if %2 {
      %cst_9 = arith.constant 0.000000e+00 : f32
      %17 = vector.broadcast %cst_9 : f32 to vector<8x128xf32>
      %c0_10 = arith.constant 0 : index
      %c0_11 = arith.constant 0 : index
      %18 = vector.load %arg7[%c0_10, %c0_11] : memref<8x128xf32, #tpu.memory_space<vmem>>, vector<8x128xf32>
      tpu.vector_store %arg7[%c0_10, %c0_11], %17 {strides = array<i32>} : memref<8x128xf32, #tpu.memory_space<vmem>>, vector<8x128xf32>,
    } else {
    }
    %c0 = arith.constant 0 : index
    %c0_1 = arith.constant 0 : index
    %3 = vector.load %arg2[%c0, %c0_1] : memref<8x32xf32, #tpu.memory_space<vmem>>, vector<8x32xf32>
    %c0_2 = arith.constant 0 : index
    %c0_3 = arith.constant 0 : index
    %4 = vector.load %arg1[%c0_2, %c0_3] : memref<1x8xi32, #tpu.memory_space<vmem>>, vector<1x8xi32>
    %5 = tpu.iota {dimensions = array<i32: 0>} : vector<8x8xi32>
    %6 = vector.broadcast %4 : vector<1x8xi32> to vector<8x8xi32>
    %7 = arith.cmpi eq, %5, %6 : vector<8x8xi32>
    %8 = arith.extui %7 : vector<8x8xi1> to vector<8x8xi32>
    %9 = arith.sitofp %8 : vector<8x8xi32> to vector<8x8xf32>
    %c0_4 = arith.constant 0 : index
    %c32 = arith.constant 32 : index
    %10 = vector.load %arg7[%c0_4, %c32] : memref<8x128xf32, #tpu.memory_space<vmem>>, vector<8x32xf32>
    %cst = arith.constant dense<0.000000e+00> : vector<8x32xf32>
    %11 = tpu.matmul %9, %3, %cst {dimension_numbers = #tpu.dot_dimension_numbers<[1], [0], [0], [1], [0, 0, 1, 1], [], []>} : vector<8x8xf32>, vector<8x32xf32>, vector<8x32xf32> -> vector<8x32xf32>
    %12 = arith.addf %10, %11 : vector<8x32xf32>
    %c0_5 = arith.constant 0 : index
    %c32_6 = arith.constant 32 : index
    %13 = vector.load %arg7[%c0_5, %c32_6] : memref<8x128xf32, #tpu.memory_space<vmem>>, vector<8x32xf32>
    tpu.vector_store %arg7[%c0_5, %c32_6], %12 {strides = array<i32>} : memref<8x128xf32, #tpu.memory_space<vmem>>, vector<8x32xf32>,
    %c0_i32_7 = arith.constant 0 : i32
    %14 = arith.cmpi eq, %arg0, %c0_i32_7 : i32
    %15 = arith.extui %14 : i1 to i32
    %c0_i32_8 = arith.constant 0 : i32
    %16 = arith.cmpi ne, %15, %c0_i32_8 : i32
    scf.if %16 {
      %c0_9 = arith.constant 0 : index
      %c0_10 = arith.constant 0 : index
      %17 = vector.load %arg3[%c0_9, %c0_10] : memref<8x128xf32, #tpu.memory_space<vmem>>, vector<8x128xf32>
      %c0_11 = arith.constant 0 : index
      %c0_12 = arith.constant 0 : index
      %18 = vector.load %arg7[%c0_11, %c0_12] : memref<8x128xf32, #tpu.memory_space<vmem>>, vector<8x128xf32>
      %19 = arith.addf %17, %18 : vector<8x128xf32>
      %c0_13 = arith.constant 0 : index
      %c0_14 = arith.constant 0 : index
      %c0_15 = arith.constant 0 : index
      %20 = vector.load %arg4[%c0_13, %c0_14, %c0_15] : memref<4x128x128xf32, #tpu.memory_space<vmem>>, vector<1x128x128xf32>
      %21 = vector.shape_cast %20 : vector<1x128x128xf32> to vector<128x128xf32>
      %cst_16 = arith.constant dense<0.000000e+00> : vector<8x128xf32>
      %22 = tpu.matmul %19, %21, %cst_16 {dimension_numbers = #tpu.dot_dimension_numbers<[1], [0], [0], [1], [0, 0, 1, 1], [], []>} : vector<8x128xf32>, vector<128x128xf32>, vector<8x128xf32> -> vector<8x128xf32>
      %c0_17 = arith.constant 0 : index
      %c0_18 = arith.constant 0 : index
      %23 = vector.load %arg5[%c0_17, %c0_18] : memref<8x128xf32, #tpu.memory_space<vmem>>, vector<1x128xf32>
      %24 = vector.broadcast %23 : vector<1x128xf32> to vector<8x128xf32>
      %25 = arith.addf %22, %24 : vector<8x128xf32>
      %cst_19 = arith.constant 0.000000e+00 : f32
      %26 = vector.broadcast %cst_19 : f32 to vector<8x128xf32>
      %27 = arith.maximumf %25, %26 : vector<8x128xf32>
      %c1 = arith.constant 1 : index
      %c0_20 = arith.constant 0 : index
      %c0_21 = arith.constant 0 : index
      %28 = vector.load %arg4[%c1, %c0_20, %c0_21] : memref<4x128x128xf32, #tpu.memory_space<vmem>>, vector<1x128x128xf32>
      %29 = vector.shape_cast %28 : vector<1x128x128xf32> to vector<128x128xf32>
      %cst_22 = arith.constant dense<0.000000e+00> : vector<8x128xf32>
      %30 = tpu.matmul %27, %29, %cst_22 {dimension_numbers = #tpu.dot_dimension_numbers<[1], [0], [0], [1], [0, 0, 1, 1], [], []>} : vector<8x128xf32>, vector<128x128xf32>, vector<8x128xf32> -> vector<8x128xf32>
      %c1_23 = arith.constant 1 : index
      %c0_24 = arith.constant 0 : index
      %31 = vector.load %arg5[%c1_23, %c0_24] : memref<8x128xf32, #tpu.memory_space<vmem>>, vector<1x128xf32>
      %32 = vector.broadcast %31 : vector<1x128xf32> to vector<8x128xf32>
      %33 = arith.addf %30, %32 : vector<8x128xf32>
      %cst_25 = arith.constant 0.000000e+00 : f32
      %34 = vector.broadcast %cst_25 : f32 to vector<8x128xf32>
      %35 = arith.maximumf %33, %34 : vector<8x128xf32>
      %c2 = arith.constant 2 : index
      %c0_26 = arith.constant 0 : index
      %c0_27 = arith.constant 0 : index
      %36 = vector.load %arg4[%c2, %c0_26, %c0_27] : memref<4x128x128xf32, #tpu.memory_space<vmem>>, vector<1x128x128xf32>
      %37 = vector.shape_cast %36 : vector<1x128x128xf32> to vector<128x128xf32>
      %cst_28 = arith.constant dense<0.000000e+00> : vector<8x128xf32>
      %38 = tpu.matmul %35, %37, %cst_28 {dimension_numbers = #tpu.dot_dimension_numbers<[1], [0], [0], [1], [0, 0, 1, 1], [], []>} : vector<8x128xf32>, vector<128x128xf32>, vector<8x128xf32> -> vector<8x128xf32>
      %c2_29 = arith.constant 2 : index
      %c0_30 = arith.constant 0 : index
      %39 = vector.load %arg5[%c2_29, %c0_30] : memref<8x128xf32, #tpu.memory_space<vmem>>, vector<1x128xf32>
      %40 = vector.broadcast %39 : vector<1x128xf32> to vector<8x128xf32>
      %41 = arith.addf %38, %40 : vector<8x128xf32>
      %cst_31 = arith.constant 0.000000e+00 : f32
      %42 = vector.broadcast %cst_31 : f32 to vector<8x128xf32>
      %43 = arith.maximumf %41, %42 : vector<8x128xf32>
      %c3 = arith.constant 3 : index
      %c0_32 = arith.constant 0 : index
      %c0_33 = arith.constant 0 : index
      %44 = vector.load %arg4[%c3, %c0_32, %c0_33] : memref<4x128x128xf32, #tpu.memory_space<vmem>>, vector<1x128x128xf32>
      %45 = vector.shape_cast %44 : vector<1x128x128xf32> to vector<128x128xf32>
      %cst_34 = arith.constant dense<0.000000e+00> : vector<8x128xf32>
      %46 = tpu.matmul %43, %45, %cst_34 {dimension_numbers = #tpu.dot_dimension_numbers<[1], [0], [0], [1], [0, 0, 1, 1], [], []>} : vector<8x128xf32>, vector<128x128xf32>, vector<8x128xf32> -> vector<8x128xf32>
      %c3_35 = arith.constant 3 : index
      %c0_36 = arith.constant 0 : index
      %47 = vector.load %arg5[%c3_35, %c0_36] : memref<8x128xf32, #tpu.memory_space<vmem>>, vector<1x128xf32>
      %48 = vector.broadcast %47 : vector<1x128xf32> to vector<8x128xf32>
      %49 = arith.addf %46, %48 : vector<8x128xf32>
      %cst_37 = arith.constant dense<0.000000e+00> : vector<8xf32>
      %50 = vector.multi_reduction <add>, %49, %cst_37 [1] : vector<8x128xf32> to vector<8xf32>
      %51 = vector.shape_cast %50 : vector<8xf32> to vector<8x1xf32>
      %cst_38 = arith.constant 3.125000e-02 : f32
      %52 = vector.broadcast %cst_38 : f32 to vector<8x1xf32>
      %53 = arith.mulf %51, %52 : vector<8x1xf32>
      %54 = tpu.iota {dimensions = array<i32: 1>} : vector<8x128xi32>
      %c32_i32 = arith.constant 32 : i32
      %55 = vector.broadcast %c32_i32 : i32 to vector<8x128xi32>
      %56 = arith.cmpi slt, %54, %55 : vector<8x128xi32>
      %57 = vector.broadcast %53 : vector<8x1xf32> to vector<8x128xf32>
      %58 = arith.subf %49, %57 : vector<8x128xf32>
      %cst_39 = arith.constant 0.000000e+00 : f32
      %59 = vector.broadcast %cst_39 : f32 to vector<8x128xf32>
      %60 = arith.select %56, %58, %59 : vector<8x128xi1>, vector<8x128xf32>
      %61 = arith.mulf %60, %60 : vector<8x128xf32>
      %cst_40 = arith.constant dense<0.000000e+00> : vector<8xf32>
      %62 = vector.multi_reduction <add>, %61, %cst_40 [1] : vector<8x128xf32> to vector<8xf32>
      %63 = vector.shape_cast %62 : vector<8xf32> to vector<8x1xf32>
      %cst_41 = arith.constant 3.125000e-02 : f32
      %64 = vector.broadcast %cst_41 : f32 to vector<8x1xf32>
      %65 = arith.mulf %63, %64 : vector<8x1xf32>
      %cst_42 = arith.constant 9.99999974E-6 : f32
      %66 = vector.broadcast %cst_42 : f32 to vector<8x1xf32>
      %67 = arith.addf %65, %66 : vector<8x1xf32>
      %68 = math.rsqrt %67 : vector<8x1xf32>
      %69 = vector.broadcast %68 : vector<8x1xf32> to vector<8x128xf32>
      %70 = arith.mulf %60, %69 : vector<8x128xf32>
      %c4 = arith.constant 4 : index
      %c0_43 = arith.constant 0 : index
      %71 = vector.load %arg5[%c4, %c0_43] : memref<8x128xf32, #tpu.memory_space<vmem>>, vector<1x128xf32>
      %72 = vector.broadcast %71 : vector<1x128xf32> to vector<8x128xf32>
      %73 = arith.mulf %70, %72 : vector<8x128xf32>
      %c5 = arith.constant 5 : index
      %c0_44 = arith.constant 0 : index
      %74 = vector.load %arg5[%c5, %c0_44] : memref<8x128xf32, #tpu.memory_space<vmem>>, vector<1x128xf32>
      %75 = vector.broadcast %74 : vector<1x128xf32> to vector<8x128xf32>
      %76 = arith.addf %73, %75 : vector<8x128xf32>
      %77 = arith.addf %17, %76 : vector<8x128xf32>
      %c0_45 = arith.constant 0 : index
      %c0_46 = arith.constant 0 : index
      %78 = vector.load %arg6[%c0_45, %c0_46] : memref<8x128xf32, #tpu.memory_space<vmem>>, vector<8x128xf32>
      tpu.vector_store %arg6[%c0_45, %c0_46], %77 {strides = array<i32>} : memref<8x128xf32, #tpu.memory_space<vmem>>, vector<8x128xf32>,
    } else {
    }
    return
  }
  func.func @transform_0(%arg0: i32) -> (i32, i32) {
    %c0_i32 = arith.constant 0 : i32
    %c0_i32_0 = arith.constant 0 : i32
    return %c0_i32, %arg0 : i32, i32
  }
  func.func @transform_1(%arg0: i32) -> (i32, i32) {
    %c0_i32 = arith.constant 0 : i32
    %c0_i32_0 = arith.constant 0 : i32
    return %arg0, %c0_i32 : i32, i32
  }
  func.func @transform_2(%arg0: i32) -> (i32, i32) {
    %c0_i32 = arith.constant 0 : i32
    %c0_i32_0 = arith.constant 0 : i32
    %c0_i32_1 = arith.constant 0 : i32
    return %c0_i32, %c0_i32_0 : i32, i32
  }
  func.func @transform_3(%arg0: i32) -> (i32, i32, i32) {
    %c0_i32 = arith.constant 0 : i32
    %c0_i32_0 = arith.constant 0 : i32
    %c0_i32_1 = arith.constant 0 : i32
    %c0_i32_2 = arith.constant 0 : i32
    return %c0_i32, %c0_i32_0, %c0_i32_1 : i32, i32, i32
  }
  func.func @transform_4(%arg0: i32) -> (i32, i32) {
    %c0_i32 = arith.constant 0 : i32
    %c0_i32_0 = arith.constant 0 : i32
    %c0_i32_1 = arith.constant 0 : i32
    return %c0_i32, %c0_i32_0 : i32, i32
  }
  func.func @transform_5(%arg0: i32) -> (i32, i32) {
    %c0_i32 = arith.constant 0 : i32
    %c0_i32_0 = arith.constant 0 : i32
    %c0_i32_1 = arith.constant 0 : i32
    return %c0_i32, %c0_i32_0 : i32, i32
  }
}

</mosaic_0001>

<bundles_post_ra>
// kernel: tpu_custom_call.1
= control target key start
LH: loop header
LB: loop body
LE: loop exit
PB: predicated region body
PF: predicated region fallthrough
CT: control target
= control target key end

     0   :  { %10 = vsyncpa [#allocation4], 0  ;;  %s1218_s0 = inlined_call_operand.hbm [shape: s32[1,8], index: 0, kind: input, shape index: {}]   ;;  %s1219_s1 = inlined_call_operand.hbm [shape: f32[8,32], index: 1, kind: input, shape index: {}]   ;;  %s1220_s2 = inlined_call_operand.hbm [shape: f32[8,128], index: 2, kind: input, shape index: {}]   ;;  %s1221_s3 = inlined_call_operand.hbm [shape: f32[4,128,128], index: 3, kind: input, shape index: {}]   ;;  %s1222_s4 = inlined_call_operand.vmem [shape: f32[8,128], index: 4, kind: input, shape index: {}]   ;;  %s1223_s5 = inlined_call_operand.hbm [shape: f32[8,128], index: 5, kind: output, shape index: {}]  }
   0x1   :  { %11 = vsyncpa [#allocation7], 0 }
   0x2   :  { %12 = vsyncpa [#allocation10], 0 }
   0x3   :  { %13 = vsyncpa [#allocation5], 0  ;;  %s1041_s18 = smov [#allocation6]   ;;  %s1042_s20 = smov [#allocation3]  }
   0x4   :  { %s30_s19 = sshll.u32 %s1041_s18, 4  ;;  %s20_s21 = sshll.u32 %s1042_s20, 4  ;;  %s31_s19 = int_to_ptr.vmem [resolvable:$true] %s30_s19  ;;  %s21_s21 = int_to_ptr.vmem [resolvable:$true] %s20_s21 }
   0x5   :  { %s923_s24 = scalar_lea.hbm %s1219_s1, 128 }
   0x6   :  { %p924_p0 = scmp.ne.s32.totalorder %s1219_s1, %s923_s24  ;;  %p927_p1 = scmp.lt.u32.totalorder %s923_s24, %s1219_s1 }
   0x8   :  { %p929_p2 = pnand %p927_p1, %p924_p0 }
   0xa   :  { %932 = shalt.err (!%p929_p2)
}
   0xb   :  { %s933_s29 = scalar_lea.vmem %s31_s19, 128  ;;  %p938_p4 = scmp.lt.s32.totalorder %s31_s19, %s31_s19 }
   0xc   :  { %p934_p3 = scmp.ne.s32.totalorder %s31_s19, %s933_s29  ;;  %p939_p5 = scmp.lt.s32.totalorder %s933_s29, %s933_s29 }
   0xe   :  { %p940_p6 = por %p939_p5, %p938_p4 }
  0x10   :  { %p941_p7 = pnand %p940_p6, %p934_p3 }
  0x12   :  { %944 = shalt.err (!%p941_p7)
}
  0x13   :  { %33 = dma.hbm_to_vmem [thread:$0]  %s1219_s1, 128, %s31_s19, [#allocation7]  }
  0x14   :  { %s945_s9 = scalar_lea.hbm %s1218_s0, 16 }
  0x15   :  { %p946_p8 = scmp.ne.s32.totalorder %s1218_s0, %s945_s9  ;;  %p949_p9 = scmp.lt.u32.totalorder %s945_s9, %s1218_s0 }
  0x17   :  { %p951_p10 = pnand %p949_p9, %p946_p8 }
  0x19   :  { %954 = shalt.err (!%p951_p10)
}
  0x1a   :  { %s955_s14 = scalar_lea.vmem %s21_s21, 16  ;;  %s959_s15 = scalar_lea.vmem %s21_s21, 32 }
  0x1b   :  { %p956_p11 = scmp.ne.s32.totalorder %s21_s21, %s955_s14  ;;  %p960_p12 = scmp.lt.s32.totalorder %s21_s21, %s21_s21 }
  0x1c   :  { %p961_p13 = scmp.lt.s32.totalorder %s959_s15, %s955_s14 }
  0x1e   :  { %p962_p0 = por %p961_p13, %p960_p12 }
  0x20   :  { %p963_p1 = pnand %p962_p0, %p956_p11 }
  0x22   :  { %966 = shalt.err (!%p963_p1)
}
  0x23   :  { %23 = dma.hbm_to_vmem [thread:$0]  %s1218_s0, 16, %s21_s21, [#allocation4]  }
  0x24   :  { %s1043_s17 = smov [#allocation8]   ;;  %s1044_s19 = smov [#allocation9]  }
  0x25   :  { %s40_s18 = sshll.u32 %s1043_s17, 4  ;;  %s49_s20 = sshll.u32 %s1044_s19, 4  ;;  %s41_s18 = int_to_ptr.vmem [resolvable:$true] %s40_s18  ;;  %s1106_s20 = int_to_ptr.vmem [resolvable:$true] %s49_s20 }
  0x26   :  { %s967_s24 = scalar_lea.hbm %s1220_s2, 128 }
  0x27   :  { %p968_p2 = scmp.ne.s32.totalorder %s1220_s2, %s967_s24  ;;  %p971_p3 = scmp.lt.u32.totalorder %s967_s24, %s1220_s2 }
  0x29   :  { %p973_p4 = pnand %p971_p3, %p968_p2 }
  0x2b   :  { %976 = shalt.err (!%p973_p4)
}
  0x2c   :  { %s977_s0 = scalar_lea.vmem %s41_s18, 128  ;;  %p982_p6 = scmp.lt.s32.totalorder %s41_s18, %s41_s18 }
  0x2d   :  { %p978_p5 = scmp.ne.s32.totalorder %s41_s18, %s977_s0  ;;  %p983_p7 = scmp.lt.s32.totalorder %s977_s0, %s977_s0 }
  0x2f   :  { %p984_p8 = por %p983_p7, %p982_p6 }
  0x31   :  { %p985_p9 = pnand %p984_p8, %p978_p5 }
  0x33   :  { %988 = shalt.err (!%p985_p9)
}
  0x34   :  { %43 = dma.hbm_to_vmem [thread:$0]  %s1220_s2, 128, %s41_s18, [#allocation7]  }
  0x35   :  { %s989_s7 = scalar_lea.hbm %s1221_s3, 8192 }
  0x36   :  { %p990_p10 = scmp.ne.s32.totalorder %s1221_s3, %s989_s7  ;;  %p993_p11 = scmp.lt.u32.totalorder %s989_s7, %s1221_s3 }
  0x38   :  { %p995_p12 = pnand %p993_p11, %p990_p10 }
  0x3a   :  { %998 = shalt.err (!%p995_p12)
}
  0x3b   :  { %s999_s12 = scalar_lea.vmem %s1106_s20, 8192  ;;  %p1004_p0 = scmp.lt.s32.totalorder %s1106_s20, %s1106_s20 }
  0x3c   :  { %p1000_p13 = scmp.ne.s32.totalorder %s1106_s20, %s999_s12  ;;  %p1005_p1 = scmp.lt.s32.totalorder %s999_s12, %s999_s12 }
  0x3e   :  { %p1006_p2 = por %p1005_p1, %p1004_p0 }
  0x40   :  { %p1007_p3 = pnand %p1006_p2, %p1000_p13 }
  0x42   :  { %1010 = shalt.err (!%p1007_p3)
}
  0x43   :  { %s1045_s2 = smov 128   ;;  %s1046_s13 = smov 8  }
  0x44   :  { %55 = dma.hbm_to_vmem [thread:$0]  %s1221_s3, 8192, %s1106_s20, [#allocation10], %s1045_s2, %s1045_s2, %s1046_s13  }
  0x45   :  { %1033 = dma.done.wait [#allocation4], 16  }
  0x46   :  { %1034 = vsyncadd [#allocation4], 4294967280 }
  0x47   :  { %1035 = dma.done.wait [#allocation7], 256  }
  0x48   :  { %1036 = vsyncadd [#allocation7], 4294967040 }
  0x49   :  { %1037 = dma.done.wait [#allocation10], 8192  }
  0x4a   :  { %1038 = vsyncadd [#allocation10], 4294959104  ;;  %v77_v0 = vlaneseq  ;;  %v1047_v1 = vmov 0.0   ;;  %vm1048_vm0 = vmmov 0   ;;  %v75_v3 = vld [vmem:[#allocation6] sm:$0xff]  ;;  %vm87_vm1 = vcmask 64512  }
  0x4b   :  { %669 = vmatprep.subr.mxu0 %v1047_v1  ;;  %74 = vst [vmem:[#allocation2] sm:$0xff] %v1047_v1  ;;  %671 = vmatprep.mubr.msk.f32.mxu0 %vm1048_vm0, %v1047_v1  ;;  %v590_v4 = vld [vmem:[#allocation3] ss:$0 sm:$0xff]  ;;  %v174_v6 = vld [vmem:[#allocation9] sm:$0xff]  ;;  %v176_v8 = vld [vmem:[#allocation9 + $0x10] sm:$0xff]  ;;  %v1049_v9 = vmov 0.0|0.0  }
  0x4c   :  { %706 = vmatprep.mubr.msk.f32.mxu1 %vm1048_vm0, %v1047_v1  ;;  %v78_v2 = vshrl.u32 %v77_v0, 7  ;;  %670 = vmatpush3.msra.mxu0 %v75_v3  ;;  %v175_v7 = vld [vmem:[#allocation9 + $0x8] sm:$0xff]  ;;  %v177_v11 = vld [vmem:[#allocation9 + $0x18] sm:$0xff]  ;;  %v178_v13 = vld [vmem:[#allocation9 + $0x20] sm:$0xff]  ;;  %s1050_s3 = smov 32   ;;  %vm166_vm3 = vcmask 523520  }
  0x4d   :  { %814 = vmatprep.subr.bf16.mxu1 %v1049_v9  ;;  %v815_v10 = vpack.c.bf16 %v175_v7, %v174_v6  ;;  %838 = vmatprep.subr.bf16.mxu0 %v1049_v9  ;;  %v818_v12 = vpack.c.bf16 %v177_v11, %v176_v8  ;;  %v179_v14 = vld [vmem:[#allocation9 + $0x28] sm:$0xff]  ;;  %v180_v16 = vld [vmem:[#allocation9 + $0x30] sm:$0xff]  ;;  %v181_v17 = vld [vmem:[#allocation9 + $0x38] sm:$0xff]  ;;  %s1051_s28 = smov [#allocation11]  }
  0x4e   :  { %vm83_vm2 = vcmp.eq.s32.totalorder %v78_v2, %v590_v4  ;;  %v821_v15 = vpack.c.bf16 %v179_v14, %v178_v13  ;;  %v824_v18 = vpack.c.bf16 %v181_v17, %v180_v16  ;;  %v182_v19 = vld [vmem:[#allocation9 + $0x40] sm:$0xff]  ;;  %v183_v20 = vld [vmem:[#allocation9 + $0x48] sm:$0xff]  ;;  %v184_v22 = vld [vmem:[#allocation9 + $0x50] sm:$0xff]  ;;  %s579_s0 = sshll.u32 %s1051_s28, 4  ;;  %s580_s0 = int_to_ptr.vmem [resolvable:$true] %s579_s0 }
  0x4f   :  { %v591_v5 = vsel %vm83_vm2, 1.0, %v1047_v1  ;;  %816 = vmatpush3.bf16.msra.mxu1 %v815_v10  ;;  %v827_v21 = vpack.c.bf16 %v183_v20, %v182_v19  ;;  %v185_v23 = vld [vmem:[#allocation9 + $0x58] sm:$0xff]  ;;  %v186_v25 = vld [vmem:[#allocation9 + $0x60] sm:$0xff]  ;;  %v187_v26 = vld [vmem:[#allocation9 + $0x68] sm:$0xff]  ;;  %s1011_s21 = scalar_lea.vmem %s580_s0, 128  ;;  %p1016_p5 = scmp.lt.s32.totalorder %s580_s0, %s580_s0 }
  0x50   :  { %672 = vmatmul.mubr.msk.f32.vlgmr.msra.gmra.mrb[0].mxu0 %vm87_vm1, %v591_v5  ;;  %817 = vmatprep.subr.bf16.mxu1 %v1049_v9  ;;  %v830_v24 = vpack.c.bf16 %v185_v23, %v184_v22  ;;  %v188_v27 = vld [vmem:[#allocation9 + $0x70] sm:$0xff]  ;;  %v833_v28 = vpack.c.bf16 %v187_v26, %v186_v25  ;;  %v189_v29 = vld [vmem:[#allocation9 + $0x78] sm:$0xff]  ;;  %v267_v32 = vld [vmem:[#allocation9 + $0x80] sm:$0xff]  ;;  %p1012_p4 = scmp.ne.s32.totalorder %s580_s0, %s1011_s21  ;;  %p1017_p6 = scmp.lt.s32.totalorder %s1011_s21, %s1011_s21 }
  0x51   :  { %741 = vmatprep.mubr.msk.f32.mxu0 %vm1048_vm0, %v1047_v1  ;;  %v836_v30 = vpack.c.bf16 %v189_v29, %v188_v27  ;;  %v268_v33 = vld [vmem:[#allocation9 + $0x88] sm:$0xff]  ;;  %v269_v34 = vld [vmem:[#allocation9 + $0x90] sm:$0xff]  ;;  %v270_v37 = vld [vmem:[#allocation9 + $0x98] sm:$0xff] }
  0x52   :  { %v839_v36 = vpack.c.bf16 %v268_v33, %v267_v32  ;;  %v842_v38 = vpack.c.bf16 %v270_v37, %v269_v34  ;;  %v271_v39 = vld [vmem:[#allocation9 + $0xa0] sm:$0xff]  ;;  %v272_v40 = vld [vmem:[#allocation9 + $0xa8] sm:$0xff]  ;;  %v273_v42 = vld [vmem:[#allocation9 + $0xb0] sm:$0xff]  ;;  %p1018_p7 = por %p1017_p6, %p1016_p5 }
  0x53   :  { %819 = vmatpush3.bf16.msra.mxu1 %v818_v12  ;;  %v845_v41 = vpack.c.bf16 %v272_v40, %v271_v39  ;;  %v274_v43 = vld [vmem:[#allocation9 + $0xb8] sm:$0xff]  ;;  %v275_v45 = vld [vmem:[#allocation9 + $0xc0] sm:$0xff]  ;;  %v276_v46 = vld [vmem:[#allocation9 + $0xc8] sm:$0xff] }
  0x54   :  { %820 = vmatprep.subr.bf16.mxu1 %v1049_v9  ;;  %840 = vmatpush3.bf16.msra.mxu0 %v839_v36  ;;  %v848_v44 = vpack.c.bf16 %v274_v43, %v273_v42  ;;  %v851_v47 = vpack.c.bf16 %v276_v46, %v275_v45  ;;  %v277_v48 = vld [vmem:[#allocation9 + $0xd0] sm:$0xff]  ;;  %v278_v49 = vld [vmem:[#allocation9 + $0xd8] sm:$0xff]  ;;  %v279_v51 = vld [vmem:[#allocation9 + $0xe0] sm:$0xff]  ;;  %p1019_p8 = pnand %p1018_p7, %p1012_p4 }
  0x55   :  { %841 = vmatprep.subr.bf16.mxu0 %v1049_v9  ;;  %v854_v50 = vpack.c.bf16 %v278_v49, %v277_v48  ;;  %v280_v52 = vld [vmem:[#allocation9 + $0xe8] sm:$0xff]  ;;  %v1164_v55 = vld [vmem:[#allocation8] sm:$0xff]  ;;  %v281_v58 = vld [vmem:[#allocation9 + $0xf0] sm:$0xff] }
  0x56   :  { %v857_v53 = vpack.c.bf16 %v280_v52, %v279_v51  ;;  %v282_v59 = vld [vmem:[#allocation9 + $0xf8] sm:$0xff]  ;;  %v360_v61 = vld [vmem:[#allocation9 + $0x100] sm:$0xff]  ;;  %v361_v62 = vld [vmem:[#allocation9 + $0x108] sm:$0xff] }
  0x57   :  { %822 = vmatpush3.bf16.msra.mxu1 %v821_v15  ;;  %v860_v60 = vpack.c.bf16 %v282_v59, %v281_v58  ;;  %v362_v63 = vld [vmem:[#allocation9 + $0x110] sm:$0xff]  ;;  %v863_v2 = vpack.c.bf16 %v361_v62, %v360_v61  ;;  %v363_v3 = vld [vmem:[#allocation9 + $0x118] sm:$0xff]  ;;  %v364_v5 = vld [vmem:[#allocation9 + $0x120] sm:$0xff] }
  0x58   :  { %823 = vmatprep.subr.bf16.mxu1 %v1049_v9  ;;  %843 = vmatpush3.bf16.msra.mxu0 %v842_v38  ;;  %v866_v4 = vpack.c.bf16 %v363_v3, %v362_v63  ;;  %v365_v6 = vld [vmem:[#allocation9 + $0x128] sm:$0xff]  ;;  %v366_v8 = vld [vmem:[#allocation9 + $0x130] sm:$0xff]  ;;  %v367_v10 = vld [vmem:[#allocation9 + $0x138] sm:$0xff] }
  0x59   :  { %844 = vmatprep.subr.bf16.mxu0 %v1049_v9  ;;  %v869_v7 = vpack.c.bf16 %v365_v6, %v364_v5  ;;  %v872_v11 = vpack.c.bf16 %v367_v10, %v366_v8  ;;  %v368_v12 = vld [vmem:[#allocation9 + $0x140] sm:$0xff]  ;;  %v369_v13 = vld [vmem:[#allocation9 + $0x148] sm:$0xff]  ;;  %v370_v15 = vld [vmem:[#allocation9 + $0x150] sm:$0xff] }
  0x5a   :  { %v875_v14 = vpack.c.bf16 %v369_v13, %v368_v12  ;;  %v371_v16 = vld [vmem:[#allocation9 + $0x158] sm:$0xff]  ;;  %v373_v19 = vld [vmem:[#allocation9 + $0x168] sm:$0xff]  ;;  %v374_v26 = vld [vmem:[#allocation9 + $0x170] sm:$0xff] }
  0x5b   :  { %825 = vmatpush3.bf16.msra.mxu1 %v824_v18  ;;  %v878_v17 = vpack.c.bf16 %v371_v16, %v370_v15  ;;  %v372_v18 = vld [vmem:[#allocation9 + $0x160] sm:$0xff]  ;;  %v375_v27 = vld [vmem:[#allocation9 + $0x178] sm:$0xff]  ;;  %v458_v36 = vld [vmem:[#allocation9 + $0x1a8] sm:$0xff] }
  0x5c   :  { %826 = vmatprep.subr.bf16.mxu1 %v1049_v9  ;;  %846 = vmatpush3.bf16.msra.mxu0 %v845_v41  ;;  %v881_v20 = vpack.c.bf16 %v373_v19, %v372_v18  ;;  %v453_v29 = vld [vmem:[#allocation9 + $0x180] sm:$0xff]  ;;  %v456_v33 = vld [vmem:[#allocation9 + $0x198] sm:$0xff]  ;;  %v462_v41 = vld [vmem:[#allocation9 + $0x1c8] sm:$0xff] }
  0x5d   :  { %847 = vmatprep.subr.bf16.mxu0 %v1049_v9  ;;  %v460_v38 = vld [vmem:[#allocation9 + $0x1b8] sm:$0xff]  ;;  %v461_v40 = vld [vmem:[#allocation9 + $0x1c0] sm:$0xff]  ;;  %v463_v43 = vld [vmem:[#allocation9 + $0x1d0] sm:$0xff] }
  0x5e   :  { %v899_v42 = vpack.c.bf16 %v462_v41, %v461_v40  ;;  %v465_v46 = vld [vmem:[#allocation9 + $0x1e0] sm:$0xff]  ;;  %v594_v49 = vld [vmem:[%s1222_s4 + $0x1] ss:$0 sm:$0xff] }
  0x5f   :  { %828 = vmatpush3.bf16.msra.mxu1 %v827_v21  ;;  %v593_v21 = vld [vmem:[%s1222_s4] ss:$0 sm:$0xff]  ;;  %v595_v58 = vld [vmem:[%s1222_s4 + $0x2] ss:$0 sm:$0xff]  ;;  %v596_v62 = vld [vmem:[%s1222_s4 + $0x3] ss:$0 sm:$0xff] }
  0x60   :  { %829 = vmatprep.subr.bf16.mxu1 %v1049_v9  ;;  %849 = vmatpush3.bf16.msra.mxu0 %v848_v44  ;;  %v464_v44 = vld [vmem:[#allocation9 + $0x1d8] sm:$0xff]  ;;  %v597_v15 = vld [vmem:[%s1222_s4 + $0x4] ss:$0 sm:$0xff] }
  0x61   :  { %850 = vmatprep.subr.bf16.mxu0 %v1049_v9  ;;  %v902_v45 = vpack.c.bf16 %v464_v44, %v463_v43 }
  0x63   :  { %831 = vmatpush3.bf16.msra.mxu1 %v830_v24 }
  0x64   :  { %832 = vmatprep.subr.bf16.mxu1 %v1049_v9  ;;  %852 = vmatpush3.bf16.msra.mxu0 %v851_v47  ;;  %v466_v47 = vld [vmem:[#allocation9 + $0x1e8] sm:$0xff] }
  0x65   :  { %853 = vmatprep.subr.bf16.mxu0 %v1049_v9  ;;  %v905_v48 = vpack.c.bf16 %v466_v47, %v465_v46 }
  0x67   :  { %834 = vmatpush3.bf16.msra.mxu1 %v833_v28  ;;  %v884_v28 = vpack.c.bf16 %v375_v27, %v374_v26 }
  0x68   :  { %835 = vmatprep.subr.bf16.mxu1 %v1049_v9  ;;  %855 = vmatpush3.bf16.msra.mxu0 %v854_v50 }
  0x69   :  { %856 = vmatprep.subr.bf16.mxu0 %v1049_v9 }
  0x6b   :  { %837 = vmatpush3.bf16.msra.mxu1 %v836_v30  ;;  %v454_v30 = vld [vmem:[#allocation9 + $0x188] sm:$0xff] }
  0x6c   :  { %862 = vmatprep.subr.bf16.mxu1 %v1049_v9  ;;  %858 = vmatpush3.bf16.msra.mxu0 %v857_v53  ;;  %v887_v32 = vpack.c.bf16 %v454_v30, %v453_v29 }
  0x6d   :  { %859 = vmatprep.subr.bf16.mxu0 %v1049_v9 }
  0x70   :  { %861 = vmatpush3.bf16.msra.mxu0 %v860_v60 }
  0x71   :  { %886 = vmatprep.subr.bf16.mxu0 %v1049_v9 }
 0x123   :  { %v157_v31 = vpop.f32.mrb[0].mxu0 }
 0x124   :  { %162 = vrot.lane.b32.xlu0 %v157_v31, %s1050_s3  ;;  %v673_v35 = vpop.f32.mrb[1].mxu0  ;;  %v455_v31 = vld [vmem:[#allocation9 + $0x190] sm:$0xff] }
 0x125   :  { %v890_v34 = vpack.c.bf16 %v456_v33, %v455_v31  ;;  %v457_v35 = vld [vmem:[#allocation9 + $0x1a0] sm:$0xff] }
 0x126   :  { %v893_v37 = vpack.c.bf16 %v458_v36, %v457_v35 }
 0x196   :  { %v163_v54 = vpop.permute.xlu0 %162 }
 0x197   :  { %167 = vst.msk [vmem:[#allocation2] sm:$0xff] %vm166_vm3, %v163_v54  ;;  %v467_v54 = vld [vmem:[#allocation9 + $0x1f0] sm:$0xff] }
 0x19e   :  { %v172_v56 = vld [vmem:[#allocation2] sm:$0xff] }
 0x19f   :  { %v173_v57 = vadd.f32 %v172_v56, %v1164_v55  ;;  %v468_v56 = vld [vmem:[#allocation9 + $0x1f8] sm:$0xff] }
 0x1a1   :  { %707 = vmatmul.mubr.f32.vlgmr.msra.gmra.mrb[0].mxu1 %v173_v57  ;;  %v908_v57 = vpack.c.bf16 %v468_v56, %v467_v54 }
 0x1a2   :  { %776 = vmatprep.mubr.msk.f32.mxu1 %vm1048_vm0, %v1047_v1  ;;  %864 = vmatpush3.bf16.msra.mxu1 %v863_v2 }
 0x1a3   :  { %865 = vmatprep.subr.bf16.mxu1 %v1049_v9 }
 0x1a6   :  { %867 = vmatpush3.bf16.msra.mxu1 %v866_v4  ;;  %v548_v4 = vand.u32 127, %v77_v0  ;;  %v598_v0 = vld [vmem:[%s1222_s4 + $0x5] ss:$0 sm:$0xff] }
 0x1a7   :  { %868 = vmatprep.subr.bf16.mxu1 %v1049_v9 }
 0x1a8   :  { %vm549_vm4 = vcmp.lt.s32.totalorder %v548_v4, 32 }
 0x1aa   :  { %870 = vmatpush3.bf16.msra.mxu1 %v869_v7 }
 0x1ab   :  { %871 = vmatprep.subr.bf16.mxu1 %v1049_v9 }
 0x1ae   :  { %873 = vmatpush3.bf16.msra.mxu1 %v872_v11 }
 0x1af   :  { %874 = vmatprep.subr.bf16.mxu1 %v1049_v9 }
 0x1b2   :  { %876 = vmatpush3.bf16.msra.mxu1 %v875_v14 }
 0x1b3   :  { %877 = vmatprep.subr.bf16.mxu1 %v1049_v9 }
 0x1b6   :  { %879 = vmatpush3.bf16.msra.mxu1 %v878_v17 }
 0x1b7   :  { %880 = vmatprep.subr.bf16.mxu1 %v1049_v9 }
 0x1ba   :  { %882 = vmatpush3.bf16.msra.mxu1 %v881_v20 }
 0x1bb   :  { %883 = vmatprep.subr.bf16.mxu1 %v1049_v9 }
 0x1be   :  { %885 = vmatpush3.bf16.msra.mxu1 %v884_v28 }
 0x274   :  { %v261_v22 = vpop.f32.mrb[0].mxu1 }
 0x275   :  { %v262_v23 = vadd.f32 %v593_v21, %v261_v22  ;;  %v708_v24 = vpop.f32.mrb[1].mxu1 }
 0x277   :  { %v265_v25 = vmax.f32 %v262_v23, 0.0 }
 0x279   :  { %742 = vmatmul.mubr.f32.vlgmr.msra.gmra.mrb[2].mxu0 %v265_v25 }
 0x27a   :  { %811 = vmatprep.mubr.msk.f32.mxu0 %vm1048_vm0, %v1047_v1  ;;  %888 = vmatpush3.bf16.msra.mxu0 %v887_v32  ;;  %v459_v1 = vld [vmem:[#allocation9 + $0x1b0] sm:$0xff] }
 0x27b   :  { %889 = vmatprep.subr.bf16.mxu0 %v1049_v9  ;;  %v896_v39 = vpack.c.bf16 %v460_v38, %v459_v1 }
 0x27e   :  { %891 = vmatpush3.bf16.msra.mxu0 %v890_v34 }
 0x27f   :  { %892 = vmatprep.subr.bf16.mxu0 %v1049_v9 }
 0x282   :  { %894 = vmatpush3.bf16.msra.mxu0 %v893_v37 }
 0x283   :  { %895 = vmatprep.subr.bf16.mxu0 %v1049_v9 }
 0x286   :  { %897 = vmatpush3.bf16.msra.mxu0 %v896_v39 }
 0x287   :  { %898 = vmatprep.subr.bf16.mxu0 %v1049_v9 }
 0x28a   :  { %900 = vmatpush3.bf16.msra.mxu0 %v899_v42 }
 0x28b   :  { %901 = vmatprep.subr.bf16.mxu0 %v1049_v9 }
 0x28e   :  { %903 = vmatpush3.bf16.msra.mxu0 %v902_v45 }
 0x28f   :  { %904 = vmatprep.subr.bf16.mxu0 %v1049_v9 }
 0x292   :  { %906 = vmatpush3.bf16.msra.mxu0 %v905_v48 }
 0x293   :  { %907 = vmatprep.subr.bf16.mxu0 %v1049_v9 }
 0x296   :  { %909 = vmatpush3.bf16.msra.mxu0 %v908_v57 }
 0x34c   :  { %v354_v50 = vpop.f32.mrb[2].mxu0 }
 0x34d   :  { %v355_v51 = vadd.f32 %v594_v49, %v354_v50  ;;  %v743_v52 = vpop.f32.mrb[3].mxu0 }
 0x34f   :  { %v358_v53 = vmax.f32 %v355_v51, 0.0 }
 0x351   :  { %777 = vmatmul.mubr.f32.vlgmr.msra.gmra.mrb[2].mxu1 %v358_v53 }
 0x424   :  { %v447_v59 = vpop.f32.mrb[2].mxu1 }
 0x425   :  { %v448_v60 = vadd.f32 %v595_v58, %v447_v59  ;;  %v778_v9 = vpop.f32.mrb[3].mxu1 }
 0x427   :  { %v451_v61 = vmax.f32 %v448_v60, 0.0 }
 0x429   :  { %812 = vmatmul.mubr.f32.vlgmr.msra.gmra.mrb[4].mxu0 %v451_v61 }
 0x4fc   :  { %v540_v63 = vpop.f32.mrb[4].mxu0 }
 0x4fd   :  { %v541_v2 = vadd.f32 %v596_v62, %v540_v63  ;;  %v813_v3 = vpop.f32.mrb[5].mxu0 }
 0x4ff   :  { %544 = vadd.xlane.f32.xlu0 %v541_v2 }
 0x58c   :  { %v545_v5 = vpop.xlane.xlu0 %544 }
 0x58d   :  { %v546_v6 = vmul.f32 0.03125, %v545_v5 }
 0x58f   :  { %v550_v7 = vsub.f32 %v541_v2, %v546_v6 }
 0x591   :  { %v551_v8 = vsel %vm549_vm4, %v550_v7, 0.0 }
 0x592   :  { %v552_v10 = vmul.f32 %v551_v8, %v551_v8 }
 0x594   :  { %553 = vadd.xlane.f32.xlu1 %v552_v10 }
 0x621   :  { %v554_v11 = vpop.xlane.xlu1 %553 }
 0x622   :  { %v555_v12 = vmul.f32 0.03125, %v554_v11 }
 0x624   :  { %v556_v13 = vadd.f32 1e-05, %v555_v12 }
 0x626   :  { %921 = vrsqrt.f32 %v556_v13 }
 0x630   :  { %v922_v14 = vpop.eup %921 }
 0x631   :  { %v558_v16 = vmul.f32 %v922_v14, %v551_v8 }
 0x633   :  { %v564_v17 = vmul.f32 %v597_v15, %v558_v16 }
 0x635   :  { %v570_v18 = vadd.f32 %v598_v0, %v564_v17 }
 0x637   :  { %v571_v19 = vadd.f32 %v570_v18, %v1164_v55 }
 0x639   :  { %572 = vst [vmem:[#allocation11] sm:$0xff] %v571_v19 }
 0x63a   :  { %1022 = shalt.err (!%p1019_p8)
}
 0x63b   :  { %s1023_s6 = scalar_lea.hbm %s1223_s5, 128 }
 0x63c   :  { %p1024_p9 = scmp.ne.s32.totalorder %s1223_s5, %s1023_s6  ;;  %p1027_p10 = scmp.lt.u32.totalorder %s1023_s6, %s1223_s5 }
 0x63e   :  { %p1029_p11 = pnand %p1027_p10, %p1024_p9 }
 0x640   :  { %1032 = shalt.err (!%p1029_p11)
}
 0x641   :  { %582 = dma.vmem_to_hbm [thread:$0]  %s580_s0, 128, %s1223_s5, [#allocation5]  }
 0x642   :  { %1039 = dma.done.wait [#allocation5], 128  }
 0x643   :  { %1040 = vsyncadd [#allocation5], 4294967168 }
 0x644   :  { %586 = vsyncpa [#allocation4], 1 }
 0x645   :  { %587 = vsyncpa [#allocation7], 1 }
 0x646   :  { %588 = vsyncpa [#allocation10], 1 }
 0x647   :  { %589 = vsyncpa [#allocation5], 1 }

</bundles_post_ra>
